<compile_context>
chip_gen: v7x
topology: tpu7x:2x2x1
jax: 0.10.0
libtpu: 0.0.40
codegen_flags: <defaults>
</compile_context>

<pallas_src>
import functools

import jax
import jax.numpy as jnp
from jax.experimental import pallas as pl
from jax.experimental.pallas import tpu as pltpu


def _mlm_kernel(x_ref, w_ref, b_ref, gamma_ref, beta_ref, wembT_ref, bias_ref,
                o_ref, hn_ref, *, approximate_gelu):
    # ---- fc -> GELU -> LayerNorm: once per row tile, reused over vocab tiles
    @pl.when(pl.program_id(1) == 0)
    def _():
        h = jnp.dot(x_ref[...], w_ref[...],
                    preferred_element_type=jnp.float32) + b_ref[...]
        if approximate_gelu:
            h = jax.nn.gelu(h, approximate=True)          # tanh path -> EUP
        else:
            # exact (erf-based) GELU, matching torch.nn.GELU() default
            h = 0.5 * h * (1.0 + jax.lax.erf(h * 0.7071067811865476))
        # LayerNorm over last dim (biased variance, eps = 1e-5), stats in f32.
        # E[h^2] - mean^2 keeps the two reductions independent.
        mean = jnp.mean(h, axis=-1, keepdims=True)
        msq = jnp.mean(h * h, axis=-1, keepdims=True)
        var = jnp.maximum(msq - mean * mean, 0.0)
        hn = (h - mean) * jax.lax.rsqrt(var + 1e-5)
        hn = hn * gamma_ref[...] + beta_ref[...]
        hn_ref[...] = hn.astype(hn_ref.dtype)

    # ---- logits tile: canonical [tm, D] x [D, tn] (embedding pre-transposed)
    logits = jnp.dot(hn_ref[...], wembT_ref[...],
                     preferred_element_type=jnp.float32)
    o_ref[...] = (logits + bias_ref[...]).astype(o_ref.dtype)


def _round_up(n, m):
    return (n + m - 1) // m * m


def _divisor_tiles(total, unit, cap):
    """Multiples of `unit` that divide `total` (<= cap), descending."""
    cap = max(unit, min(cap, total))
    return [t for t in range(cap - cap % unit, unit - 1, -unit)
            if total % t == 0] or [unit]


def _device_kind():
    try:
        return jax.devices()[0].device_kind.lower()
    except Exception:
        return ""


def _default_vmem_budget():
    kind = _device_kind()
    if "v7" in kind:
        return 48 * 1024 * 1024   # v7x: only 64 MiB physical VMEM -> headroom
    return 64 * 1024 * 1024       # v5e / v6e: 128 MiB physical VMEM


def mlm_layer(x, word_embeddings, fc_w, fc_b, ln_gamma, ln_beta, out_bias,
              *, compute_dtype=jnp.bfloat16, out_dtype=jnp.float32,
              approximate_gelu=False, tm_cap=1024, tn_cap=4096,
              vmem_budget_bytes=None):
    """MlmLayer forward.

    x:               [B, L, F]
    word_embeddings: [V, D]   (transposed once to [D, V] outside the kernel)
    fc_w:            [F, D]   (torch nn.Linear weight pre-transposed, offline)
    fc_b, ln_gamma, ln_beta: [D]
    out_bias:        broadcastable to [V]
    Returns logits [B, L, V] in out_dtype (f32 default, bf16 optional).
    """
    B, L, F = x.shape
    V, D = word_embeddings.shape
    M = B * L

    it = jnp.dtype(compute_dtype).itemsize
    out_it = jnp.dtype(out_dtype).itemsize
    if vmem_budget_bytes is None:
        vmem_budget_bytes = _default_vmem_budget()
    fit_budget = int(vmem_budget_bytes * 0.9)   # leave compiler headroom

    M_pad = _round_up(M, 8)
    V_pad = _round_up(V, 128)

    # v7x has 2 TensorCores: keep >= 2 row tiles so the parallel axis splits.
    tm_hi = tm_cap
    if "v7" in _device_kind() and M_pad >= 16:
        tm_hi = min(tm_hi, max(8, (M_pad // 2) // 8 * 8))

    def vmem_bytes(tm_, tn_):
        streamed = 2 * (D * tn_ * it + tn_ * 4 + tm_ * tn_ * out_it)
        x_blk = 2 * tm_ * F * it
        params = 2 * (F * D * it + 3 * D * 4)
        scratch = tm_ * D * it
        return streamed + x_blk + params + scratch

    # Exact-divisor tiles (avoid padded output + post-kernel slice copy).
    tm_cands = _divisor_tiles(M_pad, 8, tm_hi)
    tn_cands = _divisor_tiles(V_pad, 128, tn_cap)

    tm = tm_cands[-1]
    for t in tm_cands:                       # prefer big tm: fewer embedding re-reads
        if vmem_bytes(t, 128) <= fit_budget:
            tm = t
            break
    tn = tn_cands[-1]
    for t in tn_cands:                       # then the biggest tn that still fits
        if vmem_bytes(tm, t) <= fit_budget:
            tn = t
            break

    # ---- layout / dtype prep (one-time glue outside the kernel) ----
    x2d = x.reshape(M, F).astype(compute_dtype)
    if M_pad != M:
        x2d = jnp.pad(x2d, ((0, M_pad - M), (0, 0)))
    wembT = word_embeddings.astype(compute_dtype).T            # [D, V], once
    if V_pad != V:
        wembT = jnp.pad(wembT, ((0, 0), (0, V_pad - V)))
    bias2d = jnp.broadcast_to(out_bias.reshape(-1).astype(jnp.float32),
                              (V,)).reshape(1, V)
    if V_pad != V:
        bias2d = jnp.pad(bias2d, ((0, 0), (0, V_pad - V)))

    fc_w_c = fc_w.astype(compute_dtype)
    fc_b2d = fc_b.reshape(1, D).astype(jnp.float32)
    gamma2d = ln_gamma.reshape(1, D).astype(jnp.float32)
    beta2d = ln_beta.reshape(1, D).astype(jnp.float32)

    grid = (M_pad // tm, V_pad // tn)
    n_row_tiles = grid[0]

    cost = pl.CostEstimate(
        flops=2 * M_pad * F * D + 2 * M_pad * D * V_pad,
        transcendentals=M_pad * D,
        bytes_accessed=(
            x2d.size * it
            + n_row_tiles * (fc_w_c.size * it + 3 * D * 4)
            + n_row_tiles * (V_pad * D * it + V_pad * 4)   # embedding re-streamed
            + M_pad * V_pad * out_it                       # logits writeback
        ),
    )

    kernel = functools.partial(_mlm_kernel, approximate_gelu=approximate_gelu)

    out = pl.pallas_call(
        kernel,
        out_shape=jax.ShapeDtypeStruct((M_pad, V_pad), out_dtype),
        grid_spec=pltpu.PrefetchScalarGridSpec(
            num_scalar_prefetch=0,
            grid=grid,
            in_specs=[
                pl.BlockSpec((tm, F), lambda i, j: (i, 0)),   # x rows (constant over j)
                pl.BlockSpec((F, D), lambda i, j: (0, 0)),    # fc weight (F->D)
                pl.BlockSpec((1, D), lambda i, j: (0, 0)),    # fc bias
                pl.BlockSpec((1, D), lambda i, j: (0, 0)),    # ln gamma
                pl.BlockSpec((1, D), lambda i, j: (0, 0)),    # ln beta
                pl.BlockSpec((D, tn), lambda i, j: (0, j)),   # word_emb^T tile [D, tn]
                pl.BlockSpec((1, tn), lambda i, j: (0, j)),   # output bias tile
            ],
            out_specs=pl.BlockSpec((tm, tn), lambda i, j: (i, j)),
            scratch_shapes=[pltpu.VMEM((tm, D), compute_dtype)],  # hn scratch
        ),
        compiler_params=pltpu.CompilerParams(
            dimension_semantics=("parallel", "arbitrary"),
            vmem_limit_bytes=int(vmem_budget_bytes),
        ),
        cost_estimate=cost,
    )(x2d, fc_w_c, fc_b2d, gamma2d, beta2d, wembT, bias2d)

    if M_pad != M or V_pad != V:
        out = out[:M, :V]
    return out.reshape(B, L, V)


if __name__ == "__main__":
    # Small shapes consistent with the module.
    B, L = 2, 8
    FEAT_DIM = 32      # feat_emb_dim
    WORD_DIM = 32      # word_emb_dim
    VOCAB = 128        # vocab_size

    key = jax.random.PRNGKey(0)
    k_x, k_we, k_w, k_b = jax.random.split(key, 4)

    x = jax.random.normal(k_x, (B, L, FEAT_DIM), dtype=jnp.float32)
    word_embeddings = jax.random.normal(k_we, (VOCAB, WORD_DIM),
                                        dtype=jnp.float32)

    # Deterministic parameter init (shapes from __init__).
    # nn.Linear(feat_emb_dim, word_emb_dim): torch weight is [D, F] applied as
    # x @ W^T; stored pre-transposed as [F, D] for the kernel.
    fc_w = (jax.random.normal(k_w, (FEAT_DIM, WORD_DIM), dtype=jnp.float32)
            * (1.0 / jnp.sqrt(FEAT_DIM)))
    fc_b = (jax.random.normal(k_b, (WORD_DIM,), dtype=jnp.float32)
            * (1.0 / jnp.sqrt(FEAT_DIM)))
    ln_gamma = jnp.ones((WORD_DIM,), dtype=jnp.float32)
    ln_beta = jnp.zeros((WORD_DIM,), dtype=jnp.float32)
    out_bias = jnp.zeros((1, 1, VOCAB), dtype=jnp.float32)

    # Pure-JAX f32 reference.
    h = x @ fc_w + fc_b
    h = 0.5 * h * (1.0 + jax.lax.erf(h / jnp.sqrt(2.0)))
    mu = h.mean(-1, keepdims=True)
    var = ((h - mu) ** 2).mean(-1, keepdims=True)
    hn = (h - mu) / jnp.sqrt(var + 1e-5) * ln_gamma + ln_beta
    ref = hn @ word_embeddings.T + out_bias

    # f32 MXU path: tight check against the reference.
    logits_f32 = mlm_layer(x, word_embeddings, fc_w, fc_b, ln_gamma, ln_beta,
                           out_bias, compute_dtype=jnp.float32)
    jax.block_until_ready(logits_f32)
    assert logits_f32.shape == (B, L, VOCAB)
    assert jnp.allclose(logits_f32, ref, atol=1e-4, rtol=1e-4)

    # bf16 MXU path (production default): relaxed check.
    logits_bf16 = mlm_layer(x, word_embeddings, fc_w, fc_b, ln_gamma, ln_beta,
                            out_bias, compute_dtype=jnp.bfloat16)
    jax.block_until_ready(logits_bf16)
    assert logits_bf16.shape == (B, L, VOCAB)
    scale = jnp.max(jnp.abs(ref)) + 1e-6
    assert jnp.max(jnp.abs(logits_bf16 - ref)) / scale < 5e-2

    # bf16-output path (halves the [M, V] HBM writeback on v6e/v5e).
    logits_bf16_out = mlm_layer(x, word_embeddings, fc_w, fc_b, ln_gamma,
                                ln_beta, out_bias,
                                compute_dtype=jnp.bfloat16,
                                out_dtype=jnp.bfloat16)
    jax.block_until_ready(logits_bf16_out)
    assert logits_bf16_out.shape == (B, L, VOCAB)
    assert (jnp.max(jnp.abs(logits_bf16_out.astype(jnp.float32) - ref)) / scale
            < 5e-2)

    print("KERNEL_OK")
</pallas_src>

<mosaic_0001>
module attributes {stable_mosaic.version = 11 : i64} {
  func.func @_mlm_kernel(%arg0: i32, %arg1: i32, %arg2: memref<16x32xf32, #tpu.memory_space<vmem>>, %arg3: memref<32x32xf32, #tpu.memory_space<vmem>>, %arg4: memref<1x32xf32, #tpu.memory_space<vmem>>, %arg5: memref<1x32xf32, #tpu.memory_space<vmem>>, %arg6: memref<1x32xf32, #tpu.memory_space<vmem>>, %arg7: memref<32x128xf32, #tpu.memory_space<vmem>>, %arg8: memref<1x128xf32, #tpu.memory_space<vmem>>, %arg9: memref<16x128xf32, #tpu.memory_space<vmem>>, %arg10: memref<16x32xf32, #tpu.memory_space<vmem>>) attributes {dimension_semantics = [#tpu.dimension_semantics<parallel>, #tpu.dimension_semantics<arbitrary>], iteration_bounds = array<i64: 1, 1>, scalar_prefetch = 0 : i64, scratch_operands = 1 : i64, tpu.core_type = #tpu.core_type<tc>, window_params = [{transform_indices = @transform_0, window_bounds = array<i64: 16, 32>}, {pipeline_mode = #tpu.pipeline_mode<synchronous>, transform_indices = @transform_1, window_bounds = array<i64: 32, 32>}, {pipeline_mode = #tpu.pipeline_mode<synchronous>, transform_indices = @transform_2, window_bounds = array<i64: 1, 32>}, {pipeline_mode = #tpu.pipeline_mode<synchronous>, transform_indices = @transform_3, window_bounds = array<i64: 1, 32>}, {pipeline_mode = #tpu.pipeline_mode<synchronous>, transform_indices = @transform_4, window_bounds = array<i64: 1, 32>}, {transform_indices = @transform_5, window_bounds = array<i64: 32, 128>}, {transform_indices = @transform_6, window_bounds = array<i64: 1, 128>}, {transform_indices = @transform_7, window_bounds = array<i64: 16, 128>}]} {
    %c0_i32 = arith.constant 0 : i32
    %0 = arith.cmpi eq, %arg1, %c0_i32 : i32
    %1 = arith.extui %0 : i1 to i32
    %c0_i32_0 = arith.constant 0 : i32
    %2 = arith.cmpi ne, %1, %c0_i32_0 : i32
    scf.if %2 {
      %c0_8 = arith.constant 0 : index
      %c0_9 = arith.constant 0 : index
      %10 = vector.load %arg2[%c0_8, %c0_9] : memref<16x32xf32, #tpu.memory_space<vmem>>, vector<16x32xf32>
      %c0_10 = arith.constant 0 : index
      %c0_11 = arith.constant 0 : index
      %11 = vector.load %arg3[%c0_10, %c0_11] : memref<32x32xf32, #tpu.memory_space<vmem>>, vector<32x32xf32>
      %cst_12 = arith.constant dense<0.000000e+00> : vector<16x32xf32>
      %12 = tpu.matmul %10, %11, %cst_12 {dimension_numbers = #tpu.dot_dimension_numbers<[1], [0], [0], [1], [0, 0, 1, 1], [], []>} : vector<16x32xf32>, vector<32x32xf32>, vector<16x32xf32> -> vector<16x32xf32>
      %c0_13 = arith.constant 0 : index
      %c0_14 = arith.constant 0 : index
      %13 = vector.load %arg4[%c0_13, %c0_14] : memref<1x32xf32, #tpu.memory_space<vmem>>, vector<1x32xf32>
      %14 = vector.broadcast %13 : vector<1x32xf32> to vector<16x32xf32>
      %15 = arith.addf %12, %14 : vector<16x32xf32>
      %cst_15 = arith.constant 5.000000e-01 : f32
      %16 = vector.broadcast %cst_15 : f32 to vector<16x32xf32>
      %17 = arith.mulf %16, %15 : vector<16x32xf32>
      %cst_16 = arith.constant 0.707106769 : f32
      %18 = vector.broadcast %cst_16 : f32 to vector<16x32xf32>
      %19 = arith.mulf %15, %18 : vector<16x32xf32>
      %20 = math.erf %19 : vector<16x32xf32>
      %cst_17 = arith.constant 1.000000e+00 : f32
      %21 = vector.broadcast %cst_17 : f32 to vector<16x32xf32>
      %22 = arith.addf %21, %20 : vector<16x32xf32>
      %23 = arith.mulf %17, %22 : vector<16x32xf32>
      %cst_18 = arith.constant dense<0.000000e+00> : vector<16xf32>
      %24 = vector.multi_reduction <add>, %23, %cst_18 [1] : vector<16x32xf32> to vector<16xf32>
      %25 = vector.shape_cast %24 : vector<16xf32> to vector<16x1xf32>
      %cst_19 = arith.constant 3.200000e+01 : f32
      %26 = vector.broadcast %cst_19 : f32 to vector<16x1xf32>
      %27 = arith.divf %25, %26 : vector<16x1xf32>
      %28 = arith.mulf %23, %23 : vector<16x32xf32>
      %cst_20 = arith.constant dense<0.000000e+00> : vector<16xf32>
      %29 = vector.multi_reduction <add>, %28, %cst_20 [1] : vector<16x32xf32> to vector<16xf32>
      %30 = vector.shape_cast %29 : vector<16xf32> to vector<16x1xf32>
      %cst_21 = arith.constant 3.200000e+01 : f32
      %31 = vector.broadcast %cst_21 : f32 to vector<16x1xf32>
      %32 = arith.divf %30, %31 : vector<16x1xf32>
      %33 = arith.mulf %27, %27 : vector<16x1xf32>
      %34 = arith.subf %32, %33 : vector<16x1xf32>
      %cst_22 = arith.constant 0.000000e+00 : f32
      %35 = vector.broadcast %cst_22 : f32 to vector<16x1xf32>
      %36 = arith.maximumf %34, %35 : vector<16x1xf32>
      %37 = vector.broadcast %27 : vector<16x1xf32> to vector<16x32xf32>
      %38 = arith.subf %23, %37 : vector<16x32xf32>
      %cst_23 = arith.constant 9.99999974E-6 : f32
      %39 = vector.broadcast %cst_23 : f32 to vector<16x1xf32>
      %40 = arith.addf %36, %39 : vector<16x1xf32>
      %41 = math.rsqrt %40 : vector<16x1xf32>
      %42 = vector.broadcast %41 : vector<16x1xf32> to vector<16x32xf32>
      %43 = arith.mulf %38, %42 : vector<16x32xf32>
      %c0_24 = arith.constant 0 : index
      %c0_25 = arith.constant 0 : index
      %44 = vector.load %arg5[%c0_24, %c0_25] : memref<1x32xf32, #tpu.memory_space<vmem>>, vector<1x32xf32>
      %45 = vector.broadcast %44 : vector<1x32xf32> to vector<16x32xf32>
      %46 = arith.mulf %43, %45 : vector<16x32xf32>
      %c0_26 = arith.constant 0 : index
      %c0_27 = arith.constant 0 : index
      %47 = vector.load %arg6[%c0_26, %c0_27] : memref<1x32xf32, #tpu.memory_space<vmem>>, vector<1x32xf32>
      %48 = vector.broadcast %47 : vector<1x32xf32> to vector<16x32xf32>
      %49 = arith.addf %46, %48 : vector<16x32xf32>
      %c0_28 = arith.constant 0 : index
      %c0_29 = arith.constant 0 : index
      %50 = vector.load %arg10[%c0_28, %c0_29] : memref<16x32xf32, #tpu.memory_space<vmem>>, vector<16x32xf32>
      tpu.vector_store %arg10[%c0_28, %c0_29], %49 {strides = array<i32>} : memref<16x32xf32, #tpu.memory_space<vmem>>, vector<16x32xf32>,
    } else {
    }
    %c0 = arith.constant 0 : index
    %c0_1 = arith.constant 0 : index
    %3 = vector.load %arg10[%c0, %c0_1] : memref<16x32xf32, #tpu.memory_space<vmem>>, vector<16x32xf32>
    %c0_2 = arith.constant 0 : index
    %c0_3 = arith.constant 0 : index
    %4 = vector.load %arg7[%c0_2, %c0_3] : memref<32x128xf32, #tpu.memory_space<vmem>>, vector<32x128xf32>
    %cst = arith.constant dense<0.000000e+00> : vector<16x128xf32>
    %5 = tpu.matmul %3, %4, %cst {dimension_numbers = #tpu.dot_dimension_numbers<[1], [0], [0], [1], [0, 0, 1, 1], [], []>} : vector<16x32xf32>, vector<32x128xf32>, vector<16x128xf32> -> vector<16x128xf32>
    %c0_4 = arith.constant 0 : index
    %c0_5 = arith.constant 0 : index
    %6 = vector.load %arg8[%c0_4, %c0_5] : memref<1x128xf32, #tpu.memory_space<vmem>>, vector<1x128xf32>
    %7 = vector.broadcast %6 : vector<1x128xf32> to vector<16x128xf32>
    %8 = arith.addf %5, %7 : vector<16x128xf32>
    %c0_6 = arith.constant 0 : index
    %c0_7 = arith.constant 0 : index
    %9 = vector.load %arg9[%c0_6, %c0_7] : memref<16x128xf32, #tpu.memory_space<vmem>>, vector<16x128xf32>
    tpu.vector_store %arg9[%c0_6, %c0_7], %8 {strides = array<i32>} : memref<16x128xf32, #tpu.memory_space<vmem>>, vector<16x128xf32>,
    return
  }
  func.func @transform_0(%arg0: i32, %arg1: i32) -> (i32, i32) {
    %c0_i32 = arith.constant 0 : i32
    %c0_i32_0 = arith.constant 0 : i32
    return %arg0, %c0_i32 : i32, i32
  }
  func.func @transform_1(%arg0: i32, %arg1: i32) -> (i32, i32) {
    %c0_i32 = arith.constant 0 : i32
    %c0_i32_0 = arith.constant 0 : i32
    %c0_i32_1 = arith.constant 0 : i32
    return %c0_i32, %c0_i32_0 : i32, i32
  }
  func.func @transform_2(%arg0: i32, %arg1: i32) -> (i32, i32) {
    %c0_i32 = arith.constant 0 : i32
    %c0_i32_0 = arith.constant 0 : i32
    %c0_i32_1 = arith.constant 0 : i32
    return %c0_i32, %c0_i32_0 : i32, i32
  }
  func.func @transform_3(%arg0: i32, %arg1: i32) -> (i32, i32) {
    %c0_i32 = arith.constant 0 : i32
    %c0_i32_0 = arith.constant 0 : i32
    %c0_i32_1 = arith.constant 0 : i32
    return %c0_i32, %c0_i32_0 : i32, i32
  }
  func.func @transform_4(%arg0: i32, %arg1: i32) -> (i32, i32) {
    %c0_i32 = arith.constant 0 : i32
    %c0_i32_0 = arith.constant 0 : i32
    %c0_i32_1 = arith.constant 0 : i32
    return %c0_i32, %c0_i32_0 : i32, i32
  }
  func.func @transform_5(%arg0: i32, %arg1: i32) -> (i32, i32) {
    %c0_i32 = arith.constant 0 : i32
    %c0_i32_0 = arith.constant 0 : i32
    return %c0_i32, %arg1 : i32, i32
  }
  func.func @transform_6(%arg0: i32, %arg1: i32) -> (i32, i32) {
    %c0_i32 = arith.constant 0 : i32
    %c0_i32_0 = arith.constant 0 : i32
    return %c0_i32, %arg1 : i32, i32
  }
  func.func @transform_7(%arg0: i32, %arg1: i32) -> (i32, i32) {
    %c0_i32 = arith.constant 0 : i32
    return %arg0, %arg1 : i32, i32
  }
}

</mosaic_0001>

<bundles_post_ra>
// kernel: tpu_custom_call.1
= control target key start
LH: loop header
LB: loop body
LE: loop exit
PB: predicated region body
PF: predicated region fallthrough
CT: control target
= control target key end

     0   :  { %12 = vsyncpa [#allocation4], 0  ;;  %s838_s0 = inlined_call_operand.hbm [shape: f32[16,32], index: 0, kind: input, shape index: {}]   ;;  %s839_s1 = inlined_call_operand.hbm [shape: f32[32,32], index: 1, kind: input, shape index: {}]   ;;  %s840_s2 = inlined_call_operand.hbm [shape: f32[1,32], index: 2, kind: input, shape index: {}]   ;;  %s841_s3 = inlined_call_operand.hbm [shape: f32[1,32], index: 3, kind: input, shape index: {}]   ;;  %s842_s4 = inlined_call_operand.hbm [shape: f32[1,32], index: 4, kind: input, shape index: {}]   ;;  %s843_s5 = inlined_call_operand.hbm [shape: f32[32,128], index: 5, kind: input, shape index: {}]   ;;  %s844_s6 = inlined_call_operand.hbm [shape: f32[1,128], index: 6, kind: input, shape index: {}]   ;;  %s845_s7 = inlined_call_operand.hbm [shape: f32[16,128], index: 7, kind: output, shape index: {}]  }
   0x1   :  { %13 = vsyncpa [#allocation7], 0 }
   0x2   :  { %14 = vsyncpa [#allocation10], 0 }
   0x3   :  { %15 = vsyncpa [#allocation13], 0 }
   0x4   :  { %16 = vsyncpa [#allocation5], 0  ;;  %s655_s24 = smov [#allocation6]   ;;  %s656_s26 = smov [#allocation9]  }
   0x5   :  { %s34_s25 = sshll.u32 %s655_s24, 4  ;;  %s57_s27 = sshll.u32 %s656_s26, 4  ;;  %s35_s25 = int_to_ptr.vmem [resolvable:$true] %s34_s25  ;;  %s705_s27 = int_to_ptr.vmem [resolvable:$true] %s57_s27 }
   0x6   :  { %s469_s30 = scalar_lea.hbm %s839_s1, 512 }
   0x7   :  { %p470_p0 = scmp.ne.s32.totalorder %s839_s1, %s469_s30  ;;  %p473_p1 = scmp.lt.u32.totalorder %s469_s30, %s839_s1 }
   0x9   :  { %p475_p2 = pnand %p473_p1, %p470_p0 }
   0xb   :  { %478 = shalt.err (!%p475_p2)
}
   0xc   :  { %s479_s12 = scalar_lea.vmem %s35_s25, 512  ;;  %p484_p4 = scmp.lt.s32.totalorder %s35_s25, %s35_s25 }
   0xd   :  { %p480_p3 = scmp.ne.s32.totalorder %s35_s25, %s479_s12  ;;  %p485_p5 = scmp.lt.s32.totalorder %s479_s12, %s479_s12 }
   0xf   :  { %p486_p6 = por %p485_p5, %p484_p4 }
  0x11   :  { %p487_p7 = pnand %p486_p6, %p480_p3 }
  0x13   :  { %490 = shalt.err (!%p487_p7)
}
  0x14   :  { %s657_s13 = smov 128   ;;  %s658_s14 = smov 8  }
  0x15   :  { %40 = dma.hbm_to_vmem [thread:$0]  %s839_s1, 512, %s35_s25, [#allocation7], %s657_s13, %s657_s13, %s658_s14  }
  0x16   :  { %s491_s19 = scalar_lea.hbm %s841_s3, 16 }
  0x17   :  { %p492_p8 = scmp.ne.s32.totalorder %s841_s3, %s491_s19  ;;  %p495_p9 = scmp.lt.u32.totalorder %s491_s19, %s841_s3 }
  0x19   :  { %p497_p10 = pnand %p495_p9, %p492_p8 }
  0x1b   :  { %500 = shalt.err (!%p497_p10)
}
  0x1c   :  { %s501_s24 = scalar_lea.vmem %s705_s27, 16  ;;  %s505_s1 = scalar_lea.vmem %s705_s27, 32 }
  0x1d   :  { %p502_p11 = scmp.ne.s32.totalorder %s705_s27, %s501_s24  ;;  %p506_p12 = scmp.lt.s32.totalorder %s705_s27, %s705_s27 }
  0x1e   :  { %p507_p13 = scmp.lt.s32.totalorder %s505_s1, %s501_s24 }
  0x20   :  { %p508_p0 = por %p507_p13, %p506_p12 }
  0x22   :  { %p509_p1 = pnand %p508_p0, %p502_p11 }
  0x24   :  { %512 = shalt.err (!%p509_p1)
}
  0x25   :  { %60 = dma.hbm_to_vmem [thread:$0]  %s841_s3, 16, %s705_s27, [#allocation10]  }
  0x26   :  { %s659_s28 = smov [#allocation12]   ;;  %s660_s30 = smov [#allocation3]  }
  0x27   :  { %s76_s29 = sshll.u32 %s659_s28, 4  ;;  %s22_s8 = sshll.u32 %s660_s30, 4  ;;  %s77_s29 = int_to_ptr.vmem [resolvable:$true] %s76_s29  ;;  %s740_s8 = int_to_ptr.vmem [resolvable:$true] %s22_s8 }
  0x28   :  { %s513_s11 = scalar_lea.hbm %s843_s5, 512 }
  0x29   :  { %p514_p2 = scmp.ne.s32.totalorder %s843_s5, %s513_s11  ;;  %p517_p3 = scmp.lt.u32.totalorder %s513_s11, %s843_s5 }
  0x2b   :  { %p519_p4 = pnand %p517_p3, %p514_p2 }
  0x2d   :  { %522 = shalt.err (!%p519_p4)
}
  0x2e   :  { %s523_s3 = scalar_lea.vmem %s77_s29, 512  ;;  %p528_p6 = scmp.lt.s32.totalorder %s77_s29, %s77_s29 }
  0x2f   :  { %p524_p5 = scmp.ne.s32.totalorder %s77_s29, %s523_s3  ;;  %p529_p7 = scmp.lt.s32.totalorder %s523_s3, %s523_s3 }
  0x31   :  { %p530_p8 = por %p529_p7, %p528_p6 }
  0x33   :  { %p531_p9 = pnand %p530_p8, %p524_p5 }
  0x35   :  { %534 = shalt.err (!%p531_p9)
}
  0x36   :  { %82 = dma.hbm_to_vmem [thread:$0]  %s843_s5, 512, %s77_s29, [#allocation13], %s657_s13, %s657_s13, %s658_s14  }
  0x37   :  { %s535_s21 = scalar_lea.hbm %s838_s0, 256 }
  0x38   :  { %p536_p10 = scmp.ne.s32.totalorder %s838_s0, %s535_s21  ;;  %p539_p11 = scmp.lt.u32.totalorder %s535_s21, %s838_s0 }
  0x3a   :  { %p541_p12 = pnand %p539_p11, %p536_p10 }
  0x3c   :  { %544 = shalt.err (!%p541_p12)
}
  0x3d   :  { %s545_s25 = scalar_lea.vmem %s740_s8, 256  ;;  %p550_p0 = scmp.lt.s32.totalorder %s740_s8, %s740_s8 }
  0x3e   :  { %p546_p13 = scmp.ne.s32.totalorder %s740_s8, %s545_s25  ;;  %p551_p1 = scmp.lt.s32.totalorder %s545_s25, %s545_s25 }
  0x40   :  { %p552_p2 = por %p551_p1, %p550_p0 }
  0x42   :  { %p553_p3 = pnand %p552_p2, %p546_p13 }
  0x44   :  { %556 = shalt.err (!%p553_p3)
}
  0x45   :  { %28 = dma.hbm_to_vmem [thread:$0]  %s838_s0, 256, %s740_s8, [#allocation4], %s657_s13, %s657_s13, %s658_s14  }
  0x46   :  { %s661_s28 = smov [#allocation8]   ;;  %s662_s30 = smov [#allocation11]  }
  0x47   :  { %s47_s29 = sshll.u32 %s661_s28, 4  ;;  %s67_s9 = sshll.u32 %s662_s30, 4  ;;  %s48_s29 = int_to_ptr.vmem [resolvable:$true] %s47_s29  ;;  %s68_s9 = int_to_ptr.vmem [resolvable:$true] %s67_s9 }
  0x48   :  { %s557_s12 = scalar_lea.hbm %s840_s2, 16 }
  0x49   :  { %p558_p4 = scmp.ne.s32.totalorder %s840_s2, %s557_s12  ;;  %p561_p5 = scmp.lt.u32.totalorder %s557_s12, %s840_s2 }
  0x4b   :  { %p563_p6 = pnand %p561_p5, %p558_p4 }
  0x4d   :  { %566 = shalt.err (!%p563_p6)
}
  0x4e   :  { %s567_s0 = scalar_lea.vmem %s48_s29, 16  ;;  %s571_s8 = scalar_lea.vmem %s48_s29, 32 }
  0x4f   :  { %p568_p7 = scmp.ne.s32.totalorder %s48_s29, %s567_s0  ;;  %p572_p8 = scmp.lt.s32.totalorder %s48_s29, %s48_s29 }
  0x50   :  { %p573_p9 = scmp.lt.s32.totalorder %s571_s8, %s567_s0 }
  0x52   :  { %p574_p10 = por %p573_p9, %p572_p8 }
  0x54   :  { %p575_p11 = pnand %p574_p10, %p568_p7 }
  0x56   :  { %578 = shalt.err (!%p575_p11)
}
  0x57   :  { %50 = dma.hbm_to_vmem [thread:$0]  %s840_s2, 16, %s48_s29, [#allocation7]  }
  0x58   :  { %s579_s21 = scalar_lea.hbm %s842_s4, 16 }
  0x59   :  { %p580_p12 = scmp.ne.s32.totalorder %s842_s4, %s579_s21  ;;  %p583_p13 = scmp.lt.u32.totalorder %s579_s21, %s842_s4 }
  0x5b   :  { %p585_p0 = pnand %p583_p13, %p580_p12 }
  0x5d   :  { %588 = shalt.err (!%p585_p0)
}
  0x5e   :  { %s589_s25 = scalar_lea.vmem %s68_s9, 16  ;;  %s593_s5 = scalar_lea.vmem %s68_s9, 32 }
  0x5f   :  { %p590_p1 = scmp.ne.s32.totalorder %s68_s9, %s589_s25  ;;  %p594_p2 = scmp.lt.s32.totalorder %s68_s9, %s68_s9 }
  0x60   :  { %p595_p3 = scmp.lt.s32.totalorder %s593_s5, %s589_s25 }
  0x62   :  { %p596_p4 = por %p595_p3, %p594_p2 }
  0x64   :  { %p597_p5 = pnand %p596_p4, %p590_p1 }
  0x66   :  { %600 = shalt.err (!%p597_p5)
}
  0x67   :  { %70 = dma.hbm_to_vmem [thread:$0]  %s842_s4, 16, %s68_s9, [#allocation10]  }
  0x68   :  { %s663_s28 = smov [#allocation14]   ;;  %s601_s11 = scalar_lea.hbm %s844_s6, 16 }
  0x69   :  { %s89_s29 = sshll.u32 %s663_s28, 4  ;;  %p602_p6 = scmp.ne.s32.totalorder %s844_s6, %s601_s11  ;;  %s90_s29 = int_to_ptr.vmem [resolvable:$true] %s89_s29 }
  0x6a   :  { %p605_p7 = scmp.lt.u32.totalorder %s601_s11, %s844_s6 }
  0x6c   :  { %p607_p8 = pnand %p605_p7, %p602_p6 }
  0x6e   :  { %610 = shalt.err (!%p607_p8)
}
  0x6f   :  { %s611_s3 = scalar_lea.vmem %s90_s29, 16  ;;  %s615_s4 = scalar_lea.vmem %s90_s29, 32 }
  0x70   :  { %p612_p9 = scmp.ne.s32.totalorder %s90_s29, %s611_s3  ;;  %p616_p10 = scmp.lt.s32.totalorder %s90_s29, %s90_s29 }
  0x71   :  { %p617_p11 = scmp.lt.s32.totalorder %s615_s4, %s611_s3 }
  0x73   :  { %p618_p12 = por %p617_p11, %p616_p10 }
  0x75   :  { %p619_p13 = pnand %p618_p12, %p612_p9 }
  0x77   :  { %622 = shalt.err (!%p619_p13)
}
  0x78   :  { %92 = dma.hbm_to_vmem [thread:$0]  %s844_s6, 16, %s90_s29, [#allocation13]  }
  0x79   :  { %645 = dma.done.wait [#allocation4], 256  }
  0x7a   :  { %646 = vsyncadd [#allocation4], 4294967040 }
  0x7b   :  { %647 = dma.done.wait [#allocation7], 528  }
  0x7c   :  { %648 = vsyncadd [#allocation7], 4294966768 }
  0x7d   :  { %649 = dma.done.wait [#allocation10], 32  }
  0x7e   :  { %650 = vsyncadd [#allocation10], 4294967264 }
  0x7f   :  { %651 = dma.done.wait [#allocation13], 528  }
  0x80   :  { %652 = vsyncadd [#allocation13], 4294966768  ;;  %vm131_vm0 = vcmask 261120   ;;  %v120_v0 = vld [vmem:[#allocation6] sm:$0xff]  ;;  %v121_v1 = vld [vmem:[#allocation6 + $0x8] sm:$0xff]  ;;  %s664_s6 = smov [#allocation15]  }
  0x81   :  { %v122_v2 = vld [vmem:[#allocation6 + $0x10] sm:$0xff]  ;;  %v435_v3 = vpack.c.bf16 %v121_v1, %v120_v0  ;;  %v123_v4 = vld [vmem:[#allocation6 + $0x18] sm:$0xff]  ;;  %v393_v8 = vld [vmem:[#allocation8] ss:$0 sm:$0xff]  ;;  %s378_s8 = sshll.u32 %s664_s6, 4  ;;  %s379_s8 = int_to_ptr.vmem [resolvable:$true] %s378_s8 }
  0x82   :  { %v118_v5 = vld [vmem:[#allocation3] sm:$0xff]  ;;  %v439_v6 = vpack.c.bf16 %v123_v4, %v122_v2  ;;  %v119_v7 = vld [vmem:[#allocation3 + $0x8] sm:$0xff]  ;;  %v278_v29 = vld [vmem:[#allocation12] sm:$0xff]  ;;  %s623_s27 = scalar_lea.vmem %s379_s8, 256  ;;  %p628_p1 = scmp.lt.s32.totalorder %s379_s8, %s379_s8 }
  0x83   :  { %421 = vmatprep.mubr.msk.f32.mxu0 %vm131_vm0, %v118_v5  ;;  %436 = vmatprep.subr.bf16.mxu0 %v435_v3  ;;  %v279_v30 = vld [vmem:[#allocation12 + $0x8] sm:$0xff]  ;;  %v280_v32 = vld [vmem:[#allocation12 + $0x10] sm:$0xff]  ;;  %v281_v33 = vld [vmem:[#allocation12 + $0x18] sm:$0xff]  ;;  %p624_p0 = scmp.ne.s32.totalorder %s379_s8, %s623_s27  ;;  %p629_p2 = scmp.lt.s32.totalorder %s623_s27, %s623_s27 }
  0x84   :  { %438 = vmatpush3.bf16.msra.mxu0 %v435_v3  ;;  %v443_v31 = vpack.c.bf16 %v279_v30, %v278_v29  ;;  %v447_v34 = vpack.c.bf16 %v281_v33, %v280_v32  ;;  %v396_v53 = vld [vmem:[#allocation9] ss:$0 sm:$0xff]  ;;  %v397_v55 = vld [vmem:[#allocation11] ss:$0 sm:$0xff]  ;;  %v398_v1 = vld [vmem:[#allocation14] ss:$0 sm:$0xff] }
  0x85   :  { %440 = vmatprep.subr.bf16.mxu0 %v439_v6  ;;  %p630_p3 = por %p629_p2, %p628_p1 }
  0x86   :  { %444 = vmatprep.subr.bf16.mxu1 %v443_v31 }
  0x87   :  { %446 = vmatpush3.bf16.msra.mxu1 %v443_v31  ;;  %p631_p4 = pnand %p630_p3, %p624_p0 }
  0x88   :  { %442 = vmatpush3.bf16.msra.mxu0 %v439_v6  ;;  %448 = vmatprep.subr.bf16.mxu1 %v447_v34 }
  0x8b   :  { %422 = vmatmul.mubr.msk.f32.vlgmr.msra.gmra.mrb[0].mxu0 %vm131_vm0, %v119_v7  ;;  %450 = vmatpush3.bf16.msra.mxu1 %v447_v34 }
 0x15e   :  { %v423_v9 = vpop.f32.mrb[0].mxu0 }
 0x15f   :  { %v210_v10 = vadd.f32 %v423_v9, %v393_v8  ;;  %v204_v11 = vpop.f32.mrb[1].mxu0 }
 0x160   :  { %v205_v12 = vadd.f32 %v393_v8, %v204_v11 }
 0x161   :  { %v216_v13 = vmul.f32 0.70710677, %v210_v10  ;;  %v214_v18 = vmul.f32 0.5, %v210_v10 }
 0x162   :  { %v215_v14 = vmul.f32 0.70710677, %v205_v12  ;;  %v213_v19 = vmul.f32 0.5, %v205_v12 }
 0x163   :  { %461 = verf.f32 %v216_v13 }
 0x164   :  { %463 = verf.f32 %v215_v14 }
 0x16d   :  { %v462_v15 = vpop.eup %461 }
 0x16e   :  { %v464_v16 = vpop.eup %463  ;;  %v220_v17 = vadd.f32 1.0, %v462_v15 }
 0x16f   :  { %v219_v20 = vadd.f32 1.0, %v464_v16 }
 0x170   :  { %v222_v21 = vmul.f32 %v220_v17, %v214_v18 }
 0x171   :  { %v221_v22 = vmul.f32 %v219_v20, %v213_v19 }
 0x172   :  { %v233_v26 = vmul.f32 %v222_v21, %v222_v21  ;;  %v226_v27 = vsel %vm131_vm0, %v222_v21, 0.0 }
 0x173   :  { %v223_v23 = vsel %vm131_vm0, %v221_v22, 0.0  ;;  %v232_v24 = vmul.f32 %v221_v22, %v221_v22 }
 0x174   :  { %224 = vadd.xlane.f32.xlu0 %v223_v23  ;;  %v237_v28 = vsel %vm131_vm0, %v233_v26, 0.0 }
 0x175   :  { %v234_v25 = vsel %vm131_vm0, %v232_v24, 0.0 }
 0x176   :  { %235 = vadd.xlane.f32.xlu1 %v234_v25 }
 0x178   :  { %227 = vadd.xlane.f32.xlu0 %v226_v27 }
 0x17a   :  { %238 = vadd.xlane.f32.xlu1 %v237_v28 }
 0x201   :  { %v225_v35 = vpop.xlane.xlu0 %224 }
 0x202   :  { %v230_v36 = vmul.f32 0.03125, %v225_v35 }
 0x203   :  { %v236_v37 = vpop.xlane.xlu1 %235 }
 0x204   :  { %v242_v38 = vmul.f32 %v230_v36, %v230_v36  ;;  %v240_v39 = vmul.f32 0.03125, %v236_v37  ;;  %v248_v51 = vsub.f32 %v221_v22, %v230_v36 }
 0x205   :  { %v228_v40 = vpop.xlane.xlu0 %227 }
 0x206   :  { %v244_v41 = vsub.f32 %v240_v39, %v242_v38  ;;  %v231_v42 = vmul.f32 0.03125, %v228_v40 }
 0x207   :  { %v239_v43 = vpop.xlane.xlu1 %238 }
 0x208   :  { %v246_v44 = vmax.f32 %v244_v41, 0.0  ;;  %v243_v45 = vmul.f32 %v231_v42, %v231_v42  ;;  %v241_v46 = vmul.f32 0.03125, %v239_v43  ;;  %v249_v57 = vsub.f32 %v222_v21, %v231_v42 }
 0x20a   :  { %v250_v47 = vadd.f32 1e-05, %v246_v44  ;;  %v245_v48 = vsub.f32 %v241_v46, %v243_v45 }
 0x20c   :  { %465 = vrsqrt.f32 %v250_v47  ;;  %v247_v49 = vmax.f32 %v245_v48, 0.0 }
 0x20e   :  { %v251_v50 = vadd.f32 1e-05, %v247_v49 }
 0x210   :  { %467 = vrsqrt.f32 %v251_v50 }
 0x216   :  { %v466_v52 = vpop.eup %465 }
 0x217   :  { %v254_v54 = vmul.f32 %v466_v52, %v248_v51 }
 0x219   :  { %v263_v56 = vmul.f32 %v396_v53, %v254_v54 }
 0x21a   :  { %v468_v58 = vpop.eup %467 }
 0x21b   :  { %v272_v59 = vadd.f32 %v397_v55, %v263_v56  ;;  %v255_v60 = vmul.f32 %v468_v58, %v249_v57 }
 0x21d   :  { %274 = vst.msk [vmem:[#allocation2] sm:$0xff] %vm131_vm0, %v272_v59  ;;  %v264_v61 = vmul.f32 %v396_v53, %v255_v60 }
 0x21f   :  { %v273_v62 = vadd.f32 %v397_v55, %v264_v61 }
 0x221   :  { %275 = vst.msk [vmem:[#allocation2 + $0x8] sm:$0xff] %vm131_vm0, %v273_v62 }
 0x224   :  { %v276_v63 = vld [vmem:[#allocation2] sm:$0xff] }
 0x225   :  { %432 = vmatprep.mubr.msk.f32.mxu1 %vm131_vm0, %v276_v63 }
 0x228   :  { %v277_v0 = vld [vmem:[#allocation2 + $0x8] sm:$0xff] }
 0x229   :  { %433 = vmatmul.mubr.msk.f32.vlgmr.msra.gmra.mrb[0].mxu1 %vm131_vm0, %v277_v0 }
 0x2fc   :  { %v434_v2 = vpop.f32.mrb[0].mxu1 }
 0x2fd   :  { %v368_v3 = vadd.f32 %v434_v2, %v398_v1  ;;  %v362_v4 = vpop.f32.mrb[1].mxu1 }
 0x2fe   :  { %v363_v5 = vadd.f32 %v398_v1, %v362_v4 }
 0x2ff   :  { %372 = vst [vmem:[#allocation15 + $0x8] sm:$0xff] %v368_v3 }
 0x300   :  { %371 = vst [vmem:[#allocation15] sm:$0xff] %v363_v5 }
 0x301   :  { %634 = shalt.err (!%p631_p4)
}
 0x302   :  { %s635_s20 = scalar_lea.hbm %s845_s7, 256 }
 0x303   :  { %p636_p5 = scmp.ne.s32.totalorder %s845_s7, %s635_s20  ;;  %p639_p6 = scmp.lt.u32.totalorder %s635_s20, %s845_s7 }
 0x305   :  { %p641_p7 = pnand %p639_p6, %p636_p5 }
 0x307   :  { %644 = shalt.err (!%p641_p7)
}
 0x308   :  { %384 = dma.vmem_to_hbm [thread:$0]  %s379_s8, 256, %s845_s7, [#allocation5], %s657_s13, %s657_s13, %s658_s14  }
 0x309   :  { %653 = dma.done.wait [#allocation5], 256  }
 0x30a   :  { %654 = vsyncadd [#allocation5], 4294967040 }
 0x30b   :  { %388 = vsyncpa [#allocation4], 1 }
 0x30c   :  { %389 = vsyncpa [#allocation7], 1 }
 0x30d   :  { %390 = vsyncpa [#allocation10], 1 }
 0x30e   :  { %391 = vsyncpa [#allocation13], 1 }
 0x30f   :  { %392 = vsyncpa [#allocation5], 1 }

</bundles_post_ra>
